<compile_context>
chip_gen: v7x
topology: tpu7x:2x2x1
jax: 0.10.0
libtpu: 0.0.40
codegen_flags: <defaults>
</compile_context>

<pallas_src>
import jax
import jax.numpy as jnp
from jax.experimental import pallas as pl
from jax.experimental.pallas import tpu as pltpu


def _poincare_gather_kernel(idx_ref, *refs):
    """Gather + max_norm renorm + (subject, objects) split for one batch row.

    idx_ref   : (B, N) int32 SMEM scalar-prefetch ref (consumed only by the
                BlockSpec index_maps that drive the row gather).
    refs[:-2] : N refs of shape (1, 1, D) f32 -- the index-mapped table rows.
    refs[-2]  : (1, N-1, D) f32 subject output block (row 0 broadcast).
    refs[-1]  : (1, N-1, D) f32 objects output block (rows 1..N-1).
    """
    del idx_ref  # only used by the BlockSpec index_maps
    row_refs = refs[:-2]
    subj_ref, obj_ref = refs[-2], refs[-1]

    # Stack the N gathered rows: each ref is (1, 1, D) -> row (1, D).
    rows = jnp.concatenate([r[0] for r in row_refs], axis=0)        # (N, D)

    # torch.nn.Embedding(max_norm=1.0) renorm semantics on the gathered rows.
    sq = jnp.sum(rows * rows, axis=-1, keepdims=True)               # (N, 1)
    norm = jnp.sqrt(sq)
    scale = jnp.where(norm > 1.0, 1.0 / (norm + 1e-7), 1.0)
    renormed = rows * scale                                         # (N, D)

    # narrow(dim=1, start=1) -> objects; narrow(...,0,1).expand_as(objects) -> subject.
    obj_ref[0, :, :] = renormed[1:, :]
    subj_ref[0, :, :] = jnp.broadcast_to(renormed[0:1, :], subj_ref.shape[1:])


def static_poincare_embed_forward(indices, embed_weight):
    """indices: (B, N) int, embed_weight: (V, D) f32 -> (subject, objects).

    subject, objects: (B, N-1, D); subject is row 0 broadcast over the N-1
    object slots (matching torch's narrow + expand_as).
    """
    B, N = indices.shape
    V, D = embed_weight.shape
    assert N >= 2, "need at least (child, parent)"

    idx = indices.astype(jnp.int32)
    # (V, 1, D): single-row gather blocks then have last-two dims == full array dims.
    emb3 = embed_weight.reshape(V, 1, D)

    grid_spec = pltpu.PrefetchScalarGridSpec(
        num_scalar_prefetch=1,          # idx lands in SMEM, feeds the index_maps
        grid=(B,),
        in_specs=[
            # One spec per entity slot n: fetch table row idx[b, n].
            pl.BlockSpec((1, 1, D), (lambda b, idx_ref, n=n: (idx_ref[b, n], 0, 0)))
            for n in range(N)
        ],
        out_specs=[
            pl.BlockSpec((1, N - 1, D), lambda b, idx_ref: (b, 0, 0)),  # subject
            pl.BlockSpec((1, N - 1, D), lambda b, idx_ref: (b, 0, 0)),  # objects
        ],
    )

    subject, objects = pl.pallas_call(
        _poincare_gather_kernel,
        out_shape=(
            jax.ShapeDtypeStruct((B, N - 1, D), embed_weight.dtype),
            jax.ShapeDtypeStruct((B, N - 1, D), embed_weight.dtype),
        ),
        grid_spec=grid_spec,
        compiler_params=pltpu.CompilerParams(
            dimension_semantics=("parallel",),
        ),
    )(idx, *([emb3] * N))
    return subject, objects


def _reference_forward(indices, embed_weight):
    gathered = embed_weight[indices]                                 # (B, N, D)
    norm = jnp.linalg.norm(gathered, axis=-1, keepdims=True)
    scale = jnp.where(norm > 1.0, 1.0 / (norm + 1e-7), 1.0)
    gathered = gathered * scale
    objects = gathered[:, 1:, :]
    subject = jnp.broadcast_to(gathered[:, 0:1, :], objects.shape)
    return subject, objects


if __name__ == "__main__":
    key = jax.random.PRNGKey(0)

    # Module config (synthetic, deterministic): 16 entities, embed_dim=32.
    num_entities_vocab = 16
    embed_dim = 32

    k_w, k_i = jax.random.split(key)
    # torch.nn.Embedding.weight.data.uniform_(-0.001, 0.001)
    embed_weight = jax.random.uniform(
        k_w, (num_entities_vocab, embed_dim),
        minval=-0.001, maxval=0.001, dtype=jnp.float32,
    )

    # inputs: (batch_size, num_entities) with (child, parent, negative_parents*)
    batch_size, num_entities = 2, 4
    indices = jax.random.randint(
        k_i, (batch_size, num_entities), 0, num_entities_vocab, dtype=jnp.int32
    )

    # Check 1: spec-consistent init (norms << 1, renorm branch inactive).
    subject, objects = static_poincare_embed_forward(indices, embed_weight)
    subject = jax.block_until_ready(subject)
    objects = jax.block_until_ready(objects)
    ref_subject, ref_objects = _reference_forward(indices, embed_weight)
    assert subject.shape == (batch_size, num_entities - 1, embed_dim)
    assert objects.shape == (batch_size, num_entities - 1, embed_dim)
    assert jnp.allclose(subject, ref_subject, atol=1e-6)
    assert jnp.allclose(objects, ref_objects, atol=1e-6)

    # Check 2: scaled weights so some row norms exceed 1 -> exercises the
    # max_norm renorm path of Embedding(max_norm=1.0).
    big_weight = embed_weight * 1000.0
    subject2, objects2 = static_poincare_embed_forward(indices, big_weight)
    subject2 = jax.block_until_ready(subject2)
    objects2 = jax.block_until_ready(objects2)
    ref_subject2, ref_objects2 = _reference_forward(indices, big_weight)
    assert jnp.allclose(subject2, ref_subject2, atol=1e-6)
    assert jnp.allclose(objects2, ref_objects2, atol=1e-6)

    print("KERNEL_OK")
</pallas_src>

<mosaic_0001>
module attributes {stable_mosaic.version = 11 : i64} {
  func.func @_poincare_gather_kernel(%arg0: i32, %arg1: memref<2x4xi32, #tpu.memory_space<smem>>, %arg2: memref<1x1x32xf32, #tpu.memory_space<vmem>>, %arg3: memref<1x1x32xf32, #tpu.memory_space<vmem>>, %arg4: memref<1x1x32xf32, #tpu.memory_space<vmem>>, %arg5: memref<1x1x32xf32, #tpu.memory_space<vmem>>, %arg6: memref<1x3x32xf32, #tpu.memory_space<vmem>>, %arg7: memref<1x3x32xf32, #tpu.memory_space<vmem>>) attributes {dimension_semantics = [#tpu.dimension_semantics<parallel>], iteration_bounds = array<i64: 2>, scalar_prefetch = 1 : i64, scratch_operands = 0 : i64, tpu.core_type = #tpu.core_type<tc>, window_params = [{transform_indices = @transform_0, window_bounds = array<i64: 1, 1, 32>}, {transform_indices = @transform_1, window_bounds = array<i64: 1, 1, 32>}, {transform_indices = @transform_2, window_bounds = array<i64: 1, 1, 32>}, {transform_indices = @transform_3, window_bounds = array<i64: 1, 1, 32>}, {transform_indices = @transform_4, window_bounds = array<i64: 1, 3, 32>}, {transform_indices = @transform_5, window_bounds = array<i64: 1, 3, 32>}]} {
    %c0 = arith.constant 0 : index
    %c0_0 = arith.constant 0 : index
    %c0_1 = arith.constant 0 : index
    %0 = vector.load %arg2[%c0, %c0_0, %c0_1] : memref<1x1x32xf32, #tpu.memory_space<vmem>>, vector<1x1x32xf32>
    %1 = vector.shape_cast %0 : vector<1x1x32xf32> to vector<1x32xf32>
    %c0_2 = arith.constant 0 : index
    %c0_3 = arith.constant 0 : index
    %c0_4 = arith.constant 0 : index
    %2 = vector.load %arg3[%c0_2, %c0_3, %c0_4] : memref<1x1x32xf32, #tpu.memory_space<vmem>>, vector<1x1x32xf32>
    %3 = vector.shape_cast %2 : vector<1x1x32xf32> to vector<1x32xf32>
    %c0_5 = arith.constant 0 : index
    %c0_6 = arith.constant 0 : index
    %c0_7 = arith.constant 0 : index
    %4 = vector.load %arg4[%c0_5, %c0_6, %c0_7] : memref<1x1x32xf32, #tpu.memory_space<vmem>>, vector<1x1x32xf32>
    %5 = vector.shape_cast %4 : vector<1x1x32xf32> to vector<1x32xf32>
    %c0_8 = arith.constant 0 : index
    %c0_9 = arith.constant 0 : index
    %c0_10 = arith.constant 0 : index
    %6 = vector.load %arg5[%c0_8, %c0_9, %c0_10] : memref<1x1x32xf32, #tpu.memory_space<vmem>>, vector<1x1x32xf32>
    %7 = vector.shape_cast %6 : vector<1x1x32xf32> to vector<1x32xf32>
    %8 = tpu.concatenate %1, %3, %5, %7 in 0 : vector<1x32xf32>, vector<1x32xf32>, vector<1x32xf32>, vector<1x32xf32> -> vector<4x32xf32>
    %9 = arith.mulf %8, %8 : vector<4x32xf32>
    %cst = arith.constant dense<0.000000e+00> : vector<4xf32>
    %10 = vector.multi_reduction <add>, %9, %cst [1] : vector<4x32xf32> to vector<4xf32>
    %11 = vector.shape_cast %10 : vector<4xf32> to vector<4x1xf32>
    %12 = math.sqrt %11 : vector<4x1xf32>
    %cst_11 = arith.constant 1.000000e+00 : f32
    %13 = vector.broadcast %cst_11 : f32 to vector<4x1xf32>
    %14 = arith.cmpf ogt, %12, %13 : vector<4x1xf32>
    %cst_12 = arith.constant 1.000000e-07 : f32
    %15 = vector.broadcast %cst_12 : f32 to vector<4x1xf32>
    %16 = arith.addf %12, %15 : vector<4x1xf32>
    %cst_13 = arith.constant 1.000000e+00 : f32
    %17 = vector.broadcast %cst_13 : f32 to vector<4x1xf32>
    %18 = arith.divf %17, %16 : vector<4x1xf32>
    %cst_14 = arith.constant 1.000000e+00 : f32
    %19 = vector.broadcast %cst_14 : f32 to vector<4x1xf32>
    %20 = arith.select %14, %18, %19 : vector<4x1xi1>, vector<4x1xf32>
    %21 = vector.broadcast %20 : vector<4x1xf32> to vector<4x32xf32>
    %22 = arith.mulf %8, %21 : vector<4x32xf32>
    %23 = vector.extract_strided_slice %22 {offsets = [1, 0], sizes = [3, 32], strides = [1, 1]} : vector<4x32xf32> to vector<3x32xf32>
    %c0_15 = arith.constant 0 : index
    %c0_16 = arith.constant 0 : index
    %c0_17 = arith.constant 0 : index
    %24 = vector.load %arg7[%c0_15, %c0_16, %c0_17] : memref<1x3x32xf32, #tpu.memory_space<vmem>>, vector<1x3x32xf32>
    %25 = vector.shape_cast %24 : vector<1x3x32xf32> to vector<3x32xf32>
    %26 = vector.shape_cast %23 : vector<3x32xf32> to vector<1x3x32xf32>
    tpu.vector_store %arg7[%c0_15, %c0_16, %c0_17], %26 {strides = array<i32>} : memref<1x3x32xf32, #tpu.memory_space<vmem>>, vector<1x3x32xf32>,
    %27 = vector.extract_strided_slice %22 {offsets = [0, 0], sizes = [1, 32], strides = [1, 1]} : vector<4x32xf32> to vector<1x32xf32>
    %28 = vector.shape_cast %27 : vector<1x32xf32> to vector<1x32xf32>
    %29 = vector.broadcast %28 : vector<1x32xf32> to vector<3x32xf32>
    %c0_18 = arith.constant 0 : index
    %c0_19 = arith.constant 0 : index
    %c0_20 = arith.constant 0 : index
    %30 = vector.load %arg6[%c0_18, %c0_19, %c0_20] : memref<1x3x32xf32, #tpu.memory_space<vmem>>, vector<1x3x32xf32>
    %31 = vector.shape_cast %30 : vector<1x3x32xf32> to vector<3x32xf32>
    %32 = vector.shape_cast %29 : vector<3x32xf32> to vector<1x3x32xf32>
    tpu.vector_store %arg6[%c0_18, %c0_19, %c0_20], %32 {strides = array<i32>} : memref<1x3x32xf32, #tpu.memory_space<vmem>>, vector<1x3x32xf32>,
    return
  }
  func.func @transform_0(%arg0: i32, %arg1: memref<2x4xi32, #tpu.memory_space<smem>>) -> (i32, i32, i32) {
    %0 = arith.index_cast %arg0 : i32 to index
    %c0 = arith.constant 0 : index
    %1 = memref.load %arg1[%0, %c0] : memref<2x4xi32, #tpu.memory_space<smem>>
    %c0_i32 = arith.constant 0 : i32
    %c0_i32_0 = arith.constant 0 : i32
    %c0_i32_1 = arith.constant 0 : i32
    return %1, %c0_i32, %c0_i32_0 : i32, i32, i32
  }
  func.func @transform_1(%arg0: i32, %arg1: memref<2x4xi32, #tpu.memory_space<smem>>) -> (i32, i32, i32) {
    %0 = arith.index_cast %arg0 : i32 to index
    %c1 = arith.constant 1 : index
    %1 = memref.load %arg1[%0, %c1] : memref<2x4xi32, #tpu.memory_space<smem>>
    %c0_i32 = arith.constant 0 : i32
    %c0_i32_0 = arith.constant 0 : i32
    %c0_i32_1 = arith.constant 0 : i32
    return %1, %c0_i32, %c0_i32_0 : i32, i32, i32
  }
  func.func @transform_2(%arg0: i32, %arg1: memref<2x4xi32, #tpu.memory_space<smem>>) -> (i32, i32, i32) {
    %0 = arith.index_cast %arg0 : i32 to index
    %c2 = arith.constant 2 : index
    %1 = memref.load %arg1[%0, %c2] : memref<2x4xi32, #tpu.memory_space<smem>>
    %c0_i32 = arith.constant 0 : i32
    %c0_i32_0 = arith.constant 0 : i32
    %c0_i32_1 = arith.constant 0 : i32
    return %1, %c0_i32, %c0_i32_0 : i32, i32, i32
  }
  func.func @transform_3(%arg0: i32, %arg1: memref<2x4xi32, #tpu.memory_space<smem>>) -> (i32, i32, i32) {
    %0 = arith.index_cast %arg0 : i32 to index
    %c3 = arith.constant 3 : index
    %1 = memref.load %arg1[%0, %c3] : memref<2x4xi32, #tpu.memory_space<smem>>
    %c0_i32 = arith.constant 0 : i32
    %c0_i32_0 = arith.constant 0 : i32
    %c0_i32_1 = arith.constant 0 : i32
    return %1, %c0_i32, %c0_i32_0 : i32, i32, i32
  }
  func.func @transform_4(%arg0: i32, %arg1: memref<2x4xi32, #tpu.memory_space<smem>>) -> (i32, i32, i32) {
    %c0_i32 = arith.constant 0 : i32
    %c0_i32_0 = arith.constant 0 : i32
    %c0_i32_1 = arith.constant 0 : i32
    return %arg0, %c0_i32, %c0_i32_0 : i32, i32, i32
  }
  func.func @transform_5(%arg0: i32, %arg1: memref<2x4xi32, #tpu.memory_space<smem>>) -> (i32, i32, i32) {
    %c0_i32 = arith.constant 0 : i32
    %c0_i32_0 = arith.constant 0 : i32
    %c0_i32_1 = arith.constant 0 : i32
    return %arg0, %c0_i32, %c0_i32_0 : i32, i32, i32
  }
}

</mosaic_0001>

<bundles_post_ra>
// kernel: tpu_custom_call.1
= control target key start
LH: loop header
LB: loop body
LE: loop exit
PB: predicated region body
PF: predicated region fallthrough
CT: control target
= control target key end

     0   :  { %s1553_s0 = inlined_call_operand.hbm [shape: s32[2,4], index: 0, kind: input, shape index: {}]   ;;  %s1554_s1 = inlined_call_operand.hbm [shape: f32[16,1,32], index: 1, kind: input, shape index: {}]   ;;  %s1555_s2 = inlined_call_operand.hbm [shape: f32[16,1,32], index: 2, kind: input, shape index: {}]   ;;  %s1556_s3 = inlined_call_operand.hbm [shape: f32[16,1,32], index: 3, kind: input, shape index: {}]   ;;  %s1557_s4 = inlined_call_operand.hbm [shape: f32[16,1,32], index: 4, kind: input, shape index: {}]   ;;  %s1558_s5 = inlined_call_operand.vmem [shape: f32[2,3,32], index: 5, kind: output, shape index: {0}]   ;;  %s1559_s6 = inlined_call_operand.vmem [shape: f32[2,3,32], index: 6, kind: output, shape index: {1}]  }
   0x1   :  { %1574 = sst [smem:[#allocation31_spill]] %s1555_s2  ;;  %s782_s23 = scalar_lea.hbm %s1553_s0, 32 }
   0x2   :  { %1575 = sst [smem:[#allocation32_spill]] %s1558_s5  ;;  %p783_p0 = scmp.ne.s32.totalorder %s1553_s0, %s782_s23 }
   0x3   :  { %1576 = sst [smem:[#allocation33_spill]] %s1559_s6  ;;  %p786_p1 = scmp.lt.u32.totalorder %s782_s23, %s1553_s0 }
   0x5   :  { %p788_p2 = pnand %p786_p1, %p783_p0 }
   0x7   :  { %791 = shalt.err (!%p788_p2)  }
   0x8   :  { %s1034_s28 = smov [#allocation3]  }
   0x9   :  { %13 = dma.hbm_to_smem %s1553_s0, 32, %s1034_s28, [#allocation2] }
   0xa   :  { %964 = dma.done.wait [#allocation2], 32 }
   0xb   :  { %965 = vsyncadd [#allocation2], 4294967264 }
   0xc   :  { %15 = sfence }
   0xd   :  { %16 = vsyncpa [#allocation5], 0 }
   0xe   :  { %18 = vsyncpa [#allocation5 + $0x1], 0 }
   0xf   :  { %19 = vsyncpa [#allocation7], 0 }
  0x10   :  { %21 = vsyncpa [#allocation7 + $0x1], 0 }
  0x11   :  { %22 = vsyncpa [#allocation10], 0 }
  0x12   :  { %24 = vsyncpa [#allocation10 + $0x1], 0  ;;  %s1086_s7 = smov 0   ;;  %s1088_s8 = smov 0  }
  0x13   :  { %s1090_s9 = smov 0   ;;  %s1092_s10 = smov 0  }
  0x14   :  { %s1094_s11 = smov 0   ;;  %s1096_s0 = smov 0  }
  0x15   :  { %s1098_s12 = smov 0   ;;  %s1100_s13 = smov 0  }
  0x16   :  { %s1102_s14 = smov 0   ;;  %s1104_s15 = smov 0  }
  0x17   :  { %s1106_s16 = smov 0   ;;  %s1108_s17 = smov 0  }
  0x18   :  { %s1110_s18 = smov 0  }
  0x19 LB: > { %1577 = sst [smem:[#allocation24_spill]] %s1012_s13  ;;  %s1150_s19 = sadd.s32 4294967295, %s1032_s18   ;;  %s1032_s18 = sphi %s1110_s18, %s30_s18   ;;  %s1028_s17 = sphi %s1108_s17, %s1630_s17   ;;  %s1024_s16 = sphi %s1106_s16, %s1638_s16   ;;  %s1020_s15 = sphi %s1104_s15, %s1637_s15   ;;  %s1016_s14 = sphi %s1102_s14, %s1628_s14   ;;  %s1012_s13 = sphi %s1100_s13, %s1627_s13   ;;  %s1008_s12 = sphi %s1098_s12, %s1626_s12   ;;  %s1004_s0 = sphi %s1096_s0, %s1636_s0   ;;  %s1000_s11 = sphi %s1094_s11, %s1635_s11   ;;  %s996_s10 = sphi %s1092_s10, %s1634_s10   ;;  %s992_s9 = sphi %s1090_s9, %s1633_s9   ;;  %s988_s8 = sphi %s1088_s8, %s1632_s8   ;;  %s984_s7 = sphi %s1086_s7, %s1631_s7  }
  0x1a   : > { %1578 = sst [smem:[#allocation25_spill]] %s1016_s14  ;;  %s1153_s20 = sshll.u32 %s1032_s18, 7 }
  0x1b   : > { %1579 = sst [smem:[#allocation26_spill]] %s1028_s17  ;;  %s1156_s21 = sadd.s32 128, %s1153_s20 }
  0x1c   : > { %p1566_p3 = scmp.eq.s32.totalorder %s1032_s18, 0  ;;  %p1565_p4 = scmp.eq.s32.totalorder %s1150_s19, 0 }
  0x1d   : > { %s65_s22 = sadd.s32 1, %s1153_s20  ;;  %s68_s24 = sadd.s32 1, %s1156_s21 }
  0x1e   : > { %s66_s23 = sld [smem:[#allocation3 + %s65_s22]]  ;;  %p80_p5 = scmp.ne.s32.totalorder %s1016_s14, %s1012_s13 }
  0x1f   : > { %s69_s25 = sld [smem:[#allocation3 + %s68_s24]]  ;;  %p86_p6 = scmp.ne.s32.totalorder %s1012_s13, %s1008_s12 }
  0x20   : > { %s73_s26 = sadd.s32 1, %s1016_s14  ;;  %p1168_p7 = por %p80_p5, %p1566_p3 }
  0x21   : > { %p1174_p8 = por %p86_p6, %p1565_p4  ;;  %s245_s29 = sand.u32 1, %s1032_s18  }
  0x22   : > { %s247_s30 = sand.u32 1, %s1016_s14   ;;  %p1564_p9 = scmp.lt.s32.totalorder %s1032_s18, 2 }
  0x23   : > { %s1581_s28 = scalar_select %p1174_p8, 1, 0 }
  0x24   : > { %s248_s24 = scalar_lea.vmem [#allocation6], %s247_s30  ;;  %s1640_s22 = smov (!%p1168_p7, %s65_s22), 0 }
  0x25   : > { %1582 = sst [smem:[#allocation27_spill]] %s1581_s28  ;;  %s70_s12 = ssub.s32 %s66_s23, %s69_s25 }
  0x26   : > { %p71_p10 = scmp.eq.s32.totalorder %s70_s12, 0  ;;  %s258_s5 = sshll.u32 %s248_s24, 4  ;;  %s1202_s5 = int_to_ptr.vmem [resolvable:$true] %s258_s5 }
  0x27   : > { %s638_s6 = scalar_select %p1168_p7, [#allocation3], [#allocation12] }
  0x28   : > { %s1184_s13 = scalar_select %p71_p10, %s1016_s14, %s73_s26  }
  0x29   : > { %s1642_s6 = smov (!%p1564_p9, %s638_s6), [#allocation16]  ;;  %s1644_s22 = smov (!%p1564_p9, %s1640_s22), 0 }
  0x2a   : > { %1583 = sst [smem:[#allocation28_spill]] %s1184_s13  ;;  %p1196_p11 = pnand %p1564_p9, %p1168_p7 }
  0x2b   : > { %p619_p12 = scmp.ge.s32.totalorder %s1032_s18, 1  ;;  %s251_s25 = sld [smem:[%s1642_s6 + %s1644_s22]] }
  0x2c   : > { %p303_p13 = scmp.lt.s32.totalorder %s1032_s18, 3  ;;  %s1209_s30 = sld [smem:[#allocation3 + %s1153_s20]] }
  0x2d   : > { %s1212_s12 = sld [smem:[#allocation3 + %s1156_s21]]  ;;  %s1221_s6 = scalar_lea.sflag [#allocation7], %s245_s29 }
  0x2e   : > { %p1204_p0 = pnand %p619_p12, %p303_p13  ;;  %s1586_s2 = sld [smem:[#allocation31_spill]] }
  0x2f   : > { %p794_p5 = pneg %p1196_p11 }
  0x31   : > { %s614_s27 = sshll.u32 %s251_s25, 4 }
  0x34   : > { %s1217_s14 = scalar_lea.hbm %s1586_s2, %s614_s27  ;;  %s797_s13 = scalar_lea.hbm %s1586_s2, 256 }
  0x35   : > { %s792_s22 = scalar_lea.hbm %s1217_s14, 16  ;;  %p798_p10 = scmp.lt.u32.totalorder %s1217_s14, %s1586_s2 }
  0x36   : > { %p793_p2 = scmp.ne.s32.totalorder %s1217_s14, %s792_s22  ;;  %p799_p12 = scmp.lt.u32.totalorder %s797_s13, %s792_s22 }
  0x37   : > { %p801_p9 = scmp.lt.u32.totalorder %s792_s22, %s1217_s14 }
  0x38   : > { %p795_p6 = pnand %p794_p5, %p793_p2  ;;  %p800_p13 = por %p799_p12, %p798_p10 }
  0x3a   : > { %p796_p7 = pneg %p795_p6  ;;  %p802_p4 = por %p801_p9, %p800_p13 }
  0x3c   : > { %p803_p3 = pnand %p802_p4, %p796_p7 }
  0x3e   : > { %806 = shalt.err (!%p803_p3)
}
  0x3f   : > { %s807_s29 = scalar_lea.vmem %s1202_s5, 16  ;;  %s1035_s28 = smov [#allocation6]  }
  0x40   : > { %p808_p2 = scmp.ne.s32.totalorder %s1202_s5, %s807_s29  ;;  %s812_s25 = sshll.u32 %s1035_s28, 4  ;;  %s813_s25 = int_to_ptr.vmem [resolvable:$false] %s812_s25 }
  0x41   : > { %s814_s27 = scalar_lea.vmem %s813_s25, 32  ;;  %p815_p8 = scmp.lt.s32.totalorder %s1202_s5, %s813_s25 }
  0x42   : > { %p810_p6 = pnand %p808_p2, %p794_p5  ;;  %p816_p10 = scmp.lt.s32.totalorder %s814_s27, %s807_s29 }
  0x44   : > { %p811_p1 = pneg %p810_p6  ;;  %p817_p12 = por %p816_p10, %p815_p8 }
  0x46   : > { %p818_p9 = pnand %p817_p12, %p811_p1 }
  0x48   : > { %821 = shalt.err (!%p818_p9)
}
  0x49   : > { %661 = dma.hbm_to_vmem [thread:$0]  (!%p1196_p11), %s1217_s14, 16, %s1202_s5, %s1221_s6  }
  0x4a   : > { %s41_s23 = sadd.s32 1, %s1028_s17  ;;  %p54_p3 = scmp.ne.s32.totalorder %s1024_s16, %s1020_s15 }
  0x4b   : > { %p1587_p4 = scmp.ne.s32.totalorder %s1028_s17, %s1024_s16  ;;  %p1588_p8 = scmp.eq.s32.totalorder %s1032_s18, 0 }
  0x4c   : > { %s226_s22 = sand.u32 1, %s1028_s17   ;;  %s38_s13 = ssub.s32 %s1209_s30, %s1212_s12 }
  0x4d   : > { %p50_p1 = por %p1588_p8, %p1587_p4  ;;  %p1589_p5 = scmp.eq.s32.totalorder %s1150_s19, 0 }
  0x4e   : > { %p39_p13 = scmp.eq.s32.totalorder %s38_s13, 0  ;;  %p1592_p2 = scmp.lt.s32.totalorder %s1032_s18, 2 }
  0x4f   : > { %p1262_p7 = por %p1589_p5, %p54_p3  ;;  %s229_s12 = scalar_lea.vmem [#allocation4], %s226_s22 }
  0x50   : > { %p1268_p11 = pnand %p1592_p2, %p50_p1  ;;  %p1595_p6 = pmov %p1592_p2 }
  0x51   : > { %s1590_s24 = scalar_select %p1262_p7, 1, 0 }
  0x52   : > { %s1273_s14 = scalar_select %p39_p13, %s1028_s17, %s41_s23  }
  0x53   : > { %1591 = sst [smem:[#allocation29_spill]] %s1590_s24  ;;  %p1596_p10 = pmov %p1592_p2 }
  0x54   : > { %1594 = sst [smem:[#allocation30_spill]] %s1273_s14  ;;  %s238_s28 = sshll.u32 %s229_s12, 4  ;;  %s1286_s28 = int_to_ptr.vmem [resolvable:$true] %s238_s28 }
  0x55   : > { %s635_s15 = scalar_select %p50_p1, [#allocation3], [#allocation11] }
  0x56   : > { %s636_s29 = scalar_select %p50_p1, %s1153_s20, 0 }
  0x57   : > { %s1646_s15 = smov (!%p1595_p6, %s635_s15), [#allocation15]  ;;  %s97_s25 = sadd.s32 2, %s1153_s20 }
  0x58   : > { %s1648_s29 = smov (!%p1596_p10, %s636_s29), 0  ;;  %s1283_s27 = sld [smem:[#allocation3 + %s97_s25]] }
  0x59   : > { %s231_s30 = sld [smem:[%s1646_s15 + %s1648_s29]]  ;;  %s100_s13 = sadd.s32 2, %s1156_s21 }
  0x5a   : > { %s1288_s23 = sld [smem:[#allocation3 + %s100_s13]]  ;;  %s227_s15 = scalar_lea.sflag [#allocation5], %s226_s22 }
  0x5b   : > { %p824_p4 = pneg %p1268_p11  ;;  %s827_s17 = scalar_lea.hbm %s1554_s1, 256 }
  0x5f   : > { %s612_s2 = sshll.u32 %s231_s30, 4 }
  0x60   : > { %s1295_s24 = scalar_lea.hbm %s1554_s1, %s612_s2 }
  0x61   : > { %s822_s29 = scalar_lea.hbm %s1295_s24, 16  ;;  %p828_p5 = scmp.lt.u32.totalorder %s1295_s24, %s1554_s1 }
  0x62   : > { %p823_p3 = scmp.ne.s32.totalorder %s1295_s24, %s822_s29  ;;  %p829_p13 = scmp.lt.u32.totalorder %s827_s17, %s822_s29 }
  0x63   : > { %p831_p6 = scmp.lt.u32.totalorder %s822_s29, %s1295_s24 }
  0x64   : > { %p825_p8 = pnand %p824_p4, %p823_p3  ;;  %p830_p2 = por %p829_p13, %p828_p5 }
  0x66   : > { %p826_p1 = pneg %p825_p8  ;;  %p832_p10 = por %p831_p6, %p830_p2 }
  0x68   : > { %p833_p9 = pnand %p832_p10, %p826_p1 }
  0x6a   : > { %836 = shalt.err (!%p833_p9)
}
  0x6b   : > { %s837_s22 = scalar_lea.vmem %s1286_s28, 16  ;;  %s1036_s13 = smov [#allocation4]  }
  0x6c   : > { %p838_p3 = scmp.ne.s32.totalorder %s1286_s28, %s837_s22  ;;  %s842_s30 = sshll.u32 %s1036_s13, 4  ;;  %s843_s30 = int_to_ptr.vmem [resolvable:$false] %s842_s30 }
  0x6d   : > { %s844_s12 = scalar_lea.vmem %s843_s30, 32  ;;  %p845_p7 = scmp.lt.s32.totalorder %s1286_s28, %s843_s30 }
  0x6e   : > { %p840_p8 = pnand %p838_p3, %p824_p4  ;;  %p846_p5 = scmp.lt.s32.totalorder %s844_s12, %s837_s22 }
  0x70   : > { %p841_p12 = pneg %p840_p8  ;;  %p847_p13 = por %p846_p5, %p845_p7 }
  0x72   : > { %p848_p2 = pnand %p847_p13, %p841_p12 }
  0x74   : > { %851 = shalt.err (!%p848_p2)
}
  0x75   : > { %656 = dma.hbm_to_vmem [thread:$0]  (!%p1268_p11), %s1295_s24, 16, %s1286_s28, %s227_s15  }
  0x76   : > { %p1597_p7 = scmp.eq.s32.totalorder %s1032_s18, 0  ;;  %p1598_p12 = scmp.ne.s32.totalorder %s1004_s0, %s1000_s11 }
  0x77   : > { %p1600_p4 = scmp.eq.s32.totalorder %s1150_s19, 0  ;;  %p1601_p1 = scmp.ne.s32.totalorder %s1000_s11, %s996_s10 }
  0x78   : > { %p1329_p9 = por %p1598_p12, %p1597_p7  ;;  %s105_s17 = sadd.s32 1, %s1004_s0 }
  0x79   : > { %p1338_p6 = por %p1601_p1, %p1600_p4  ;;  %s267_s24 = sand.u32 1, %s1004_s0  }
  0x7a   : > { %s102_s28 = ssub.s32 %s1283_s27, %s1288_s23  ;;  %s1650_s25 = smov (!%p1329_p9, %s97_s25), 0 }
  0x7b   : > { %s1602_s29 = scalar_select %p1338_p6, 1, 0 }
  0x7c   : > { %p103_p11 = scmp.eq.s32.totalorder %s102_s28, 0  ;;  %p1603_p10 = scmp.lt.s32.totalorder %s1032_s18, 2 }
  0x7d   : > { %s641_s15 = scalar_select %p1329_p9, [#allocation3], [#allocation13] }
  0x7e   : > { %s1349_s2 = scalar_select %p103_p11, %s1004_s0, %s105_s17  }
  0x7f   : > { %s1652_s15 = smov (!%p1603_p10, %s641_s15), [#allocation17]  ;;  %p1604_p3 = pmov %p1603_p10 }
  0x80   : > { %s268_s10 = scalar_lea.vmem [#allocation8], %s267_s24  ;;  %s129_s22 = sadd.s32 3, %s1153_s20 }
  0x81   : > { %s1654_s25 = smov (!%p1604_p3, %s1650_s25), 0  ;;  %s278_s14 = sshll.u32 %s268_s10, 4  ;;  %s1373_s14 = int_to_ptr.vmem [resolvable:$true] %s278_s14 }
  0x82   : > { %p1605_p8 = pmov %p1604_p3  ;;  %s271_s23 = sld [smem:[%s1652_s15 + %s1654_s25]] }
  0x83   : > { %s1370_s13 = sld [smem:[#allocation3 + %s129_s22]]  ;;  %s132_s30 = sadd.s32 3, %s1156_s21 }
  0x84   : > { %p1363_p5 = pnand %p1605_p8, %p1329_p9  ;;  %s1375_s12 = sld [smem:[#allocation3 + %s132_s30]] }
  0x85   : > { %s857_s10 = scalar_lea.hbm %s1556_s3, 256 }
  0x86   : > { %p854_p12 = pneg %p1363_p5 }
  0x88   : > { %s616_s17 = sshll.u32 %s271_s23, 4 }
  0x89   : > { %s1382_s28 = scalar_lea.hbm %s1556_s3, %s616_s17 }
  0x8a   : > { %s852_s25 = scalar_lea.hbm %s1382_s28, 16  ;;  %p858_p1 = scmp.lt.u32.totalorder %s1382_s28, %s1556_s3 }
  0x8b   : > { %p853_p7 = scmp.ne.s32.totalorder %s1382_s28, %s852_s25  ;;  %p859_p11 = scmp.lt.u32.totalorder %s857_s10, %s852_s25 }
  0x8c   : > { %p861_p3 = scmp.lt.u32.totalorder %s852_s25, %s1382_s28 }
  0x8d   : > { %p855_p9 = pnand %p854_p12, %p853_p7  ;;  %p860_p10 = por %p859_p11, %p858_p1 }
  0x8f   : > { %p856_p4 = pneg %p855_p9  ;;  %p862_p8 = por %p861_p3, %p860_p10 }
  0x91   : > { %p863_p2 = pnand %p862_p8, %p856_p4 }
  0x93   : > { %866 = shalt.err (!%p863_p2)
}
  0x94   : > { %s867_s17 = scalar_lea.vmem %s1373_s14, 16  ;;  %s1037_s5 = smov [#allocation8]  }
  0x95   : > { %p868_p7 = scmp.ne.s32.totalorder %s1373_s14, %s867_s17  ;;  %s872_s24 = sshll.u32 %s1037_s5, 4  ;;  %s873_s24 = int_to_ptr.vmem [resolvable:$false] %s872_s24 }
  0x96   : > { %s874_s21 = scalar_lea.vmem %s873_s24, 32  ;;  %p875_p6 = scmp.lt.s32.totalorder %s1373_s14, %s873_s24 }
  0x97   : > { %p870_p9 = pnand %p868_p7, %p854_p12  ;;  %p876_p1 = scmp.lt.s32.totalorder %s874_s21, %s867_s17 }
  0x99   : > { %p871_p13 = pneg %p870_p9  ;;  %p877_p11 = por %p876_p1, %p875_p6 }
  0x9b   : > { %p878_p10 = pnand %p877_p11, %p871_p13 }
  0x9d   : > { %881 = shalt.err (!%p878_p10)
}
  0x9e   : > { %666 = dma.hbm_to_vmem [thread:$0]  (!%p1363_p5), %s1382_s28, 16, %s1373_s14, %s1221_s6  }
  0x9f   : > { %p1607_p6 = scmp.eq.s32.totalorder %s1032_s18, 0  ;;  %p1608_p13 = scmp.ne.s32.totalorder %s992_s9, %s988_s8 }
  0xa0   : > { %p1609_p12 = scmp.eq.s32.totalorder %s1150_s19, 0  ;;  %p1610_p4 = scmp.ne.s32.totalorder %s988_s8, %s984_s7 }
  0xa1   : > { %p146_p2 = por %p1608_p13, %p1607_p6  ;;  %s134_s25 = ssub.s32 %s1370_s13, %s1375_s12 }
  0xa2   : > { %p1422_p3 = por %p1610_p4, %p1609_p12  ;;  %s137_s15 = sadd.s32 1, %s992_s9 }
  0xa3   : > { %p135_p8 = scmp.eq.s32.totalorder %s134_s25, 0  ;;  %s285_s10 = sand.u32 1, %s992_s9  }
  0xa4   : > { %s1611_s27 = scalar_select %p1422_p3, 1, 0 }
  0xa5   : > { %s644_s23 = scalar_select %p146_p2, [#allocation3], [#allocation14] }
  0xa6   : > { %s1431_s30 = scalar_select %p135_p8, %s992_s9, %s137_s15  }
  0xa7   : > { %s1656_s22 = smov (!%p146_p2, %s129_s22), 0  ;;  %p1612_p7 = scmp.lt.s32.totalorder %s1032_s18, 2 }
  0xa8   : > { %s288_s14 = scalar_lea.vmem [#allocation9], %s285_s10  ;;  %s286_s5 = scalar_lea.sflag [#allocation10], %s285_s10 }
  0xa9   : > { %s1658_s23 = smov (!%p1612_p7, %s644_s23), [#allocation18]  ;;  %p1613_p5 = pmov %p1612_p7 }
  0xaa   : > { %s298_s13 = sshll.u32 %s288_s14, 4  ;;  %s887_s25 = scalar_lea.hbm %s1557_s4, 256  ;;  %s1445_s13 = int_to_ptr.vmem [resolvable:$true] %s298_s13 }
  0xab   : > { %s1660_s22 = smov (!%p1613_p5, %s1656_s22), 0  ;;  %p1614_p9 = pmov %p1613_p5 }
  0xac   : > { %s291_s6 = sld [smem:[%s1658_s23 + %s1660_s22]] }
  0xad   : > { %p1441_p1 = pnand %p1614_p9, %p146_p2 }
  0xaf   : > { %p884_p10 = pneg %p1441_p1 }
  0xb2   : > { %s618_s12 = sshll.u32 %s291_s6, 4 }
  0xb3   : > { %s1450_s17 = scalar_lea.hbm %s1557_s4, %s618_s12 }
  0xb4   : > { %s882_s24 = scalar_lea.hbm %s1450_s17, 16  ;;  %p888_p2 = scmp.lt.u32.totalorder %s1450_s17, %s1557_s4 }
  0xb5   : > { %p883_p11 = scmp.ne.s32.totalorder %s1450_s17, %s882_s24  ;;  %p889_p12 = scmp.lt.u32.totalorder %s887_s25, %s882_s24 }
  0xb6   : > { %p891_p8 = scmp.lt.u32.totalorder %s882_s24, %s1450_s17 }
  0xb7   : > { %p885_p6 = pnand %p884_p10, %p883_p11  ;;  %p890_p4 = por %p889_p12, %p888_p2 }
  0xb9   : > { %p886_p13 = pneg %p885_p6  ;;  %p892_p7 = por %p891_p8, %p890_p4 }
  0xbb   : > { %p893_p5 = pnand %p892_p7, %p886_p13 }
  0xbd   : > { %896 = shalt.err (!%p893_p5)
}
  0xbe   : > { %s897_s10 = scalar_lea.vmem %s1445_s13, 16  ;;  %s1038_s6 = smov [#allocation9]  }
  0xbf   : > { %p898_p9 = scmp.ne.s32.totalorder %s1445_s13, %s897_s10  ;;  %s902_s14 = sshll.u32 %s1038_s6, 4  ;;  %s903_s14 = int_to_ptr.vmem [resolvable:$false] %s902_s14 }
  0xc0   : > { %s904_s12 = scalar_lea.vmem %s903_s14, 32  ;;  %p905_p3 = scmp.lt.s32.totalorder %s1445_s13, %s903_s14 }
  0xc1   : > { %p900_p11 = pnand %p898_p9, %p884_p10  ;;  %p906_p2 = scmp.lt.s32.totalorder %s904_s12, %s897_s10 }
  0xc3   : > { %p901_p6 = pneg %p900_p11  ;;  %p907_p12 = por %p906_p2, %p905_p3 }
  0xc5   : > { %p908_p4 = pnand %p907_p12, %p901_p6 }
  0xc7   : > { %911 = shalt.err (!%p908_p4)
}
  0xc8   : > { %671 = dma.hbm_to_vmem [thread:$0]  (!%p1441_p1), %s1450_s17, 16, %s1445_s13, %s286_s5  }
  0xc9   : > { %307 = sbr.rel (%p1204_p0) target bundleno = 409 (0x199), region = 36  ;;  %s1616_s28 = sld [smem:[#allocation29_spill]] (!%p1204_p0) }
  0xca   : > { %s309_s20 = sand.u32 (!%p1204_p0), 1, %s1024_s16  }
  0xcb   : > { %s310_s24 = scalar_lea.sflag (!%p1204_p0), [#allocation5], %s309_s20  ;;  %s312_s22 = scalar_lea.vmem (!%p1204_p0), [#allocation4], %s309_s20 }
  0xcf   : > { %p1617_p10 = scmp.ne.s32.totalorder (!%p1204_p0), %s1616_s28, 0 }
  0xd1   : > { %967 = dma.done.wait (%p1617_p10), %s310_s24, 16  }
  0xd2   : > { %969 = vsyncadd (%p1617_p10), %s310_s24, 4294967280  ;;  %s1618_s21 = sld [smem:[#allocation24_spill]]  ;;  %s1619_s25 = sld [smem:[#allocation27_spill]] }
  0xd3   : > { %s317_s7 = sand.u32 1, %s1150_s19  }
  0xd4   : > { %s318_s23 = scalar_lea.sflag [#allocation7], %s317_s7 }
  0xd8   : > { %s319_s15 = sand.u32 1, %s1618_s21   ;;  %p1620_p3 = scmp.ne.s32.totalorder %s1619_s25, 0 }
  0xd9   : > { %s320_s13 = scalar_lea.vmem [#allocation6], %s319_s15 }
  0xda   : > { %971 = dma.done.wait (%p1620_p3), %s318_s23, 16  }
  0xdb   : > { %973 = vsyncadd (%p1620_p3), %s318_s23, 4294967280  ;;  %s327_s26 = sand.u32 1, %s1000_s11   ;;  %p1621_p0 = scmp.ne.s32.totalorder %s1602_s29, 0 }
  0xdc   : > { %s328_s17 = scalar_lea.vmem [#allocation8], %s327_s26 }
  0xdd   : > { %975 = dma.done.wait (%p1621_p0), %s318_s23, 16  }
  0xde   : > { %977 = vsyncadd (%p1621_p0), %s318_s23, 4294967280  ;;  %s333_s5 = sand.u32 1, %s988_s8   ;;  %p1622_p1 = scmp.ne.s32.totalorder %s1611_s27, 0 }
  0xdf   : > { %s334_s10 = scalar_lea.sflag [#allocation10], %s333_s5  ;;  %s336_s6 = scalar_lea.vmem [#allocation9], %s333_s5 }
  0xe0   : > { %979 = dma.done.wait (%p1622_p1), %s334_s10, 16  }
  0xe1   : > { %981 = vsyncadd (%p1622_p1), %s334_s10, 4294967280  ;;  %vm418_vm0 = vcmask 1040384   ;;  %vm420_vm1 = vcmask 1041408   ;;  %vm422_vm2 = vcmask 1042432   ;;  %v396_v0 = vld [vmem:[%s312_s22] sm:$0x1]  ;;  %v444_v16 = vlaneseq }
  0xe2   : > { %v622_v1 = vld [vmem:[%s320_s13] ss:$0 sm:$0xff]  ;;  %vm425_vm3 = vcmask 257024   ;;  %p388_p13 = scmp.lt.s32.totalorder %s1150_s19, 1  ;;  %s1623_s12 = sld [smem:[#allocation33_spill]]  ;;  %vm442_vm7 = vcmask 257025  }
  0xe3   : > { %v623_v2 = vld [vmem:[%s328_s17] ss:$0 sm:$0xff]  ;;  %v419_v4 = vsel %vm418_vm0, %v396_v0, %v622_v1  ;;  %v445_v17 = vshrl.u32 %v444_v16, 7  ;;  %s1624_s22 = sld [smem:[#allocation32_spill]]  ;;  %vm448_vm8 = vcmask 256000  }
  0xe4   : > { %v624_v3 = vld [vmem:[%s336_s6] ss:$0 sm:$0xff]  ;;  %v421_v5 = vsel %vm420_vm1, %v419_v4, %v623_v2  ;;  %s1662_s19 = smov (!%p388_p13, %s1150_s19), 1 }
  0xe5   : > { %v423_v6 = vsel %vm422_vm2, %v421_v5, %v624_v3  ;;  %s620_s29 = sshll.u32 %s1662_s19, 2  ;;  %v446_v19 = vsub.s32 0, %v445_v17 }
  0xe6   : > { %v424_v7 = vmul.f32 %v423_v6, %v423_v6 }
  0xe8   : > { %v426_v8 = vsel %vm425_vm3, %v424_v7, 0.0  ;;  %s395_s28 = scalar_lea.vmem %s1623_s12, %s620_s29 }
  0xe9   : > { %427 = vadd.xlane.f32.xlu0 %v426_v8  ;;  %s391_s21 = scalar_lea.vmem %s1624_s22, %s620_s29 }
 0x176   : > { %v428_v9 = vpop.xlane.xlu0 %427 }
 0x177   : > { %778 = vrsqrt.f32 %v428_v9  ;;  %vm431_vm4 = vcmp.eq.f32.partialorder %v428_v9, inf  ;;  %v434_v12 = vand.u32 2147483648, %v428_v9  ;;  %vm433_vm5 = vcmp.eq.f32.partialorder %v428_v9, 0.0 }
 0x181   : > { %v779_v10 = vpop.eup %778 }
 0x182   : > { %v430_v11 = vmul.f32 %v779_v10, %v428_v9 }
 0x184   : > { %v432_v13 = vsel %vm431_vm4, %v428_v9, %v430_v11 }
 0x185   : > { %v435_v14 = vsel %vm433_vm5, %v434_v12, %v432_v13 }
 0x186   : > { %v437_v15 = vadd.f32 1e-07, %v435_v14  ;;  %vm436_vm6 = vcmp.gt.f32.partialorder %v435_v14, 1.0 }
 0x188   : > { %780 = vrcp.f32 %v437_v15 }
 0x192   : > { %v781_v18 = vpop.eup %780 }
 0x193   : > { %v440_v20 = vsel %vm436_vm6, %v781_v18, 1.0 }
 0x194   : > { %v441_v21 = vmul.f32 %v440_v20, %v423_v6 }
 0x196   : > { %443 = vst.msk [vmem:[%s395_s28 - $0x1] sm:$0xe] %vm442_vm7, %v441_v21  ;;  %v447_v22 = vrot.slane %v441_v21, %v446_v19 }
 0x198   : > { %449 = vst.msk [vmem:[%s391_s21] sm:$0x7] %vm448_vm8, %v447_v22 }
 0x199 PF: > { %s30_s18 = sadd.s32 1, %s1032_s18   ;;  %s1626_s12 = sld [smem:[#allocation24_spill]] }
 0x19a   : > { %p1509_p8 = scmp.ge.s32.totalorder %s30_s18, 4   ;;  %s1627_s13 = sld [smem:[#allocation25_spill]] }
 0x19b   : > { %s1628_s14 = sld [smem:[#allocation28_spill]]  ;;  %s1629_s25 = sld [smem:[#allocation26_spill]] }
 0x19c   : > { %s1630_s17 = sld [smem:[#allocation30_spill]]  ;;  %s1631_s7 = smov %s988_s8 }
 0x19d   : > { %s1632_s8 = smov %s992_s9  ;;  %s1633_s9 = smov %s1431_s30 }
 0x19e   : > { %s1634_s10 = smov %s1000_s11  ;;  %s1635_s11 = smov %s1004_s0 }
 0x19f   : > { %s1636_s0 = smov %s1349_s2  ;;  %s1637_s15 = smov %s1024_s16 }
 0x1a0   :  { %29 = sbr.rel (!%p1509_p8) target bundleno = 25 (0x19), region = 125 }
 0x1a1   : > { %s1638_s16 = smov %s1629_s25 }
 0x1a7   :  { %483 = vsyncpa [#allocation5], 1 }
 0x1a8   :  { %485 = vsyncpa [#allocation5 + $0x1], 1 }
 0x1a9   :  { %486 = vsyncpa [#allocation7], 1 }
 0x1aa   :  { %488 = vsyncpa [#allocation7 + $0x1], 1 }
 0x1ab   :  { %489 = vsyncpa [#allocation10], 1 }
 0x1ac   :  { %491 = vsyncpa [#allocation10 + $0x1], 1 }

</bundles_post_ra>
